<compile_context>
chip_gen: v6e
topology: v6e:2x2x1
jax: 0.10.0
libtpu: 0.0.40
codegen_flags: <defaults>
</compile_context>

<pallas_src>
import math

import jax
import jax.numpy as jnp
from jax.experimental import pallas as pl
from jax.experimental.pallas import tpu as pltpu

NUM_HEADS = 4
MODEL_SIZE = 32          # size
HEAD_SIZE = MODEL_SIZE // NUM_HEADS
SEQ = 8                  # sequence length (Sq == Sk here)
BATCH = 2


def _attention_kernel(q_ref, k_ref, v_ref, mask_ref,
                      wq_ref, bq_ref, wk_ref, bk_ref, wv_ref, bv_ref,
                      wo_ref, bo_ref, o_ref):
    """Whole (tiny) problem in one step.

    q_ref/k_ref/v_ref: (B, S, D) activations.
    mask_ref:          (B, Sq, Sk) int32 (nonzero = keep).
    wq has 1/sqrt(hd) pre-folded; all weights are (D, D), biases (1, D).
    """
    D = wo_ref.shape[0]
    H = NUM_HEADS
    hd = D // H

    # Three independent projections (separate MXU pushes are free at this size;
    # avoids lane-offset re-slicing of a packed 3D-wide result).
    q3 = jnp.einsum("bsd,de->bse", q_ref[...], wq_ref[...],
                    preferred_element_type=jnp.float32) + bq_ref[...]   # (B,Sq,D)
    k3 = jnp.einsum("bsd,de->bse", k_ref[...], wk_ref[...],
                    preferred_element_type=jnp.float32) + bk_ref[...]   # (B,Sk,D)
    v3 = jnp.einsum("bsd,de->bse", v_ref[...], wv_ref[...],
                    preferred_element_type=jnp.float32) + bv_ref[...]   # (B,Sk,D)

    # Additive mask bias, computed once (one vselect total instead of one per head).
    # -1e30 (large finite) instead of -inf so fully-masked rows cannot NaN.
    bias = jnp.where(mask_ref[...] != 0, jnp.float32(0.0), jnp.float32(-1e30))

    # Output accumulator lives in registers; o_ref is stored exactly once.
    out_acc = jnp.broadcast_to(bo_ref[...], q3.shape).astype(jnp.float32)

    # Static unroll over heads. Head slices of the activations are static lane
    # slices; the Wo slice is a cheap sublane (row) slice.
    for h in range(H):
        lo = h * hd
        hi = lo + hd
        qh = q3[:, :, lo:hi]                                   # (B, Sq, hd)
        kh = k3[:, :, lo:hi]                                   # (B, Sk, hd)
        vh = v3[:, :, lo:hi]                                   # (B, Sk, hd)

        s = jnp.einsum("bqd,bkd->bqk", qh, kh,
                       preferred_element_type=jnp.float32) + bias       # (B,Sq,Sk)

        m = jnp.max(s, axis=-1, keepdims=True)
        p = jnp.exp(s - m)
        denom = jnp.sum(p, axis=-1, keepdims=True)
        attn = p / denom                                        # exact softmax

        ctx_h = jnp.einsum("bqk,bkd->bqd", attn, vh,
                           preferred_element_type=jnp.float32)  # (B, Sq, hd)

        # Accumulate this head's contribution to the output projection.
        out_acc = out_acc + jnp.einsum("bqd,dn->bqn", ctx_h, wo_ref[lo:hi, :],
                                       preferred_element_type=jnp.float32)

    o_ref[...] = out_acc.astype(o_ref.dtype)


def pack_kernel_params(params):
    """One-time parameter packing: fold 1/sqrt(head_size) into Wq / bq."""
    scale = jnp.float32(1.0 / math.sqrt(HEAD_SIZE))
    return {
        "wq": params["wq"] * scale,
        "bq": params["bq"] * scale,
        "wk": params["wk"],
        "bk": params["bk"],
        "wv": params["wv"],
        "bv": params["bv"],
        "wo": params["wo"],
        "bo": params["bo"],
    }


def attention_forward(q, k, v, mask, kparams):
    """q,k,v: (B, S, D) float32; mask: (B, 1, Sq, Sk) bool; kparams from pack_kernel_params."""
    B, Sq, D = q.shape
    Sk = k.shape[1]

    mask_i = mask.reshape(B, Sq, Sk).astype(jnp.int32)

    full = lambda *shape: pl.BlockSpec(shape, lambda i: (0,) * len(shape))

    grid_spec = pltpu.PrefetchScalarGridSpec(
        num_scalar_prefetch=0,
        grid=(1,),  # whole problem in one step: per-step overhead dominates at this size
        in_specs=[
            full(B, Sq, D),        # q
            full(B, Sk, D),        # k
            full(B, Sk, D),        # v
            full(B, Sq, Sk),       # mask (int32)
            full(D, D), full(1, D),   # Wq (pre-scaled), bq (pre-scaled)
            full(D, D), full(1, D),   # Wk, bk
            full(D, D), full(1, D),   # Wv, bv
            full(D, D), full(1, D),   # Wo, bo
        ],
        out_specs=full(B, Sq, D),
    )

    out = pl.pallas_call(
        _attention_kernel,
        out_shape=jax.ShapeDtypeStruct((B, Sq, D), jnp.float32),
        grid_spec=grid_spec,
        compiler_params=pltpu.CompilerParams(
            dimension_semantics=("arbitrary",)),
    )(q, k, v, mask_i,
      kparams["wq"], kparams["bq"],
      kparams["wk"], kparams["bk"],
      kparams["wv"], kparams["bv"],
      kparams["wo"], kparams["bo"])

    return out


def reference_forward(q, k, v, mask, params):
    """Pure-JAX reference matching the PyTorch module semantics."""
    B, Sq, D = q.shape
    H, hd = NUM_HEADS, HEAD_SIZE

    def lin(x, w, b):
        return x @ w + b[0]

    qp = lin(q, params["wq"], params["bq"]).reshape(B, -1, H, hd).transpose(0, 2, 1, 3)
    kp = lin(k, params["wk"], params["bk"]).reshape(B, -1, H, hd).transpose(0, 2, 1, 3)
    vp = lin(v, params["wv"], params["bv"]).reshape(B, -1, H, hd).transpose(0, 2, 1, 3)

    qp = qp / math.sqrt(hd)
    scores = jnp.einsum("bhqd,bhkd->bhqk", qp, kp)
    scores = jnp.where(mask, scores, -jnp.inf)   # broadcast (B,1,Sq,Sk) over heads
    attn = jax.nn.softmax(scores, axis=-1)
    ctx = jnp.einsum("bhqk,bhkd->bhqd", attn, vp)
    ctx = ctx.transpose(0, 2, 1, 3).reshape(B, -1, H * hd)
    return lin(ctx, params["wo"], params["bo"])


def make_params(key):
    keys = jax.random.split(key, 8)
    scale = 0.02
    D = MODEL_SIZE
    return {
        "wq": scale * jax.random.normal(keys[0], (D, D), jnp.float32),
        "bq": scale * jax.random.normal(keys[1], (1, D), jnp.float32),
        "wk": scale * jax.random.normal(keys[2], (D, D), jnp.float32),
        "bk": scale * jax.random.normal(keys[3], (1, D), jnp.float32),
        "wv": scale * jax.random.normal(keys[4], (D, D), jnp.float32),
        "bv": scale * jax.random.normal(keys[5], (1, D), jnp.float32),
        "wo": scale * jax.random.normal(keys[6], (D, D), jnp.float32),
        "bo": scale * jax.random.normal(keys[7], (1, D), jnp.float32),
    }


if __name__ == "__main__":
    key = jax.random.PRNGKey(0)
    k_params, k_q, k_k, k_v = jax.random.split(key, 4)

    params = make_params(k_params)
    kparams = pack_kernel_params(params)   # one-time: scale folded into Wq/bq

    q = jax.random.normal(k_q, (BATCH, SEQ, MODEL_SIZE), jnp.float32)
    k = jax.random.normal(k_k, (BATCH, SEQ, MODEL_SIZE), jnp.float32)
    v = jax.random.normal(k_v, (BATCH, SEQ, MODEL_SIZE), jnp.float32)

    # Causal mask, broadcast over heads (every row has >= 1 valid key).
    causal = jnp.tril(jnp.ones((SEQ, SEQ), dtype=bool))
    mask = jnp.broadcast_to(causal, (BATCH, 1, SEQ, SEQ))

    out = attention_forward(q, k, v, mask, kparams)
    out = jax.block_until_ready(out)

    ref = reference_forward(q, k, v, mask, params)
    assert out.shape == (BATCH, SEQ, MODEL_SIZE)
    err = float(jnp.max(jnp.abs(out - ref)))
    assert err < 2e-5, f"mismatch vs reference: max abs err = {err}"

    print("KERNEL_OK")
</pallas_src>

<mosaic_0001>
module attributes {stable_mosaic.version = 11 : i64} {
  func.func @_attention_kernel(%arg0: i32, %arg1: memref<2x8x32xf32, #tpu.memory_space<vmem>>, %arg2: memref<2x8x32xf32, #tpu.memory_space<vmem>>, %arg3: memref<2x8x32xf32, #tpu.memory_space<vmem>>, %arg4: memref<2x8x8xi32, #tpu.memory_space<vmem>>, %arg5: memref<32x32xf32, #tpu.memory_space<vmem>>, %arg6: memref<1x32xf32, #tpu.memory_space<vmem>>, %arg7: memref<32x32xf32, #tpu.memory_space<vmem>>, %arg8: memref<1x32xf32, #tpu.memory_space<vmem>>, %arg9: memref<32x32xf32, #tpu.memory_space<vmem>>, %arg10: memref<1x32xf32, #tpu.memory_space<vmem>>, %arg11: memref<32x32xf32, #tpu.memory_space<vmem>>, %arg12: memref<1x32xf32, #tpu.memory_space<vmem>>, %arg13: memref<2x8x32xf32, #tpu.memory_space<vmem>>) attributes {dimension_semantics = [#tpu.dimension_semantics<arbitrary>], iteration_bounds = array<i64: 1>, scalar_prefetch = 0 : i64, scratch_operands = 0 : i64, tpu.core_type = #tpu.core_type<tc>, window_params = [{pipeline_mode = #tpu.pipeline_mode<synchronous>, transform_indices = @transform_0, window_bounds = array<i64: 2, 8, 32>}, {pipeline_mode = #tpu.pipeline_mode<synchronous>, transform_indices = @transform_1, window_bounds = array<i64: 2, 8, 32>}, {pipeline_mode = #tpu.pipeline_mode<synchronous>, transform_indices = @transform_2, window_bounds = array<i64: 2, 8, 32>}, {pipeline_mode = #tpu.pipeline_mode<synchronous>, transform_indices = @transform_3, window_bounds = array<i64: 2, 8, 8>}, {pipeline_mode = #tpu.pipeline_mode<synchronous>, transform_indices = @transform_4, window_bounds = array<i64: 32, 32>}, {pipeline_mode = #tpu.pipeline_mode<synchronous>, transform_indices = @transform_5, window_bounds = array<i64: 1, 32>}, {pipeline_mode = #tpu.pipeline_mode<synchronous>, transform_indices = @transform_6, window_bounds = array<i64: 32, 32>}, {pipeline_mode = #tpu.pipeline_mode<synchronous>, transform_indices = @transform_7, window_bounds = array<i64: 1, 32>}, {pipeline_mode = #tpu.pipeline_mode<synchronous>, transform_indices = @transform_8, window_bounds = array<i64: 32, 32>}, {pipeline_mode = #tpu.pipeline_mode<synchronous>, transform_indices = @transform_9, window_bounds = array<i64: 1, 32>}, {pipeline_mode = #tpu.pipeline_mode<synchronous>, transform_indices = @transform_10, window_bounds = array<i64: 32, 32>}, {pipeline_mode = #tpu.pipeline_mode<synchronous>, transform_indices = @transform_11, window_bounds = array<i64: 1, 32>}, {pipeline_mode = #tpu.pipeline_mode<synchronous>, transform_indices = @transform_12, window_bounds = array<i64: 2, 8, 32>}]} {
    %c0 = arith.constant 0 : index
    %c0_0 = arith.constant 0 : index
    %c0_1 = arith.constant 0 : index
    %0 = vector.load %arg1[%c0, %c0_0, %c0_1] : memref<2x8x32xf32, #tpu.memory_space<vmem>>, vector<2x8x32xf32>
    %c0_2 = arith.constant 0 : index
    %c0_3 = arith.constant 0 : index
    %1 = vector.load %arg5[%c0_2, %c0_3] : memref<32x32xf32, #tpu.memory_space<vmem>>, vector<32x32xf32>
    "tpu.trace_start"() <{level = 10 : i32, message = "bsd,de->bse"}> : () -> ()
    %cst = arith.constant dense<0.000000e+00> : vector<2x8x32xf32>
    %2 = tpu.matmul %0, %1, %cst {dimension_numbers = #tpu.dot_dimension_numbers<[2], [0], [0, 1], [1], [0, 0, 0, 1, 1, 1], [], []>} : vector<2x8x32xf32>, vector<32x32xf32>, vector<2x8x32xf32> -> vector<2x8x32xf32>
    "tpu.trace_stop"() : () -> ()
    %c0_4 = arith.constant 0 : index
    %c0_5 = arith.constant 0 : index
    %3 = vector.load %arg6[%c0_4, %c0_5] : memref<1x32xf32, #tpu.memory_space<vmem>>, vector<1x32xf32>
    %4 = vector.shape_cast %3 : vector<1x32xf32> to vector<1x1x32xf32>
    %5 = vector.broadcast %4 : vector<1x1x32xf32> to vector<2x8x32xf32>
    %6 = arith.addf %2, %5 : vector<2x8x32xf32>
    %c0_6 = arith.constant 0 : index
    %c0_7 = arith.constant 0 : index
    %c0_8 = arith.constant 0 : index
    %7 = vector.load %arg2[%c0_6, %c0_7, %c0_8] : memref<2x8x32xf32, #tpu.memory_space<vmem>>, vector<2x8x32xf32>
    %c0_9 = arith.constant 0 : index
    %c0_10 = arith.constant 0 : index
    %8 = vector.load %arg7[%c0_9, %c0_10] : memref<32x32xf32, #tpu.memory_space<vmem>>, vector<32x32xf32>
    "tpu.trace_start"() <{level = 10 : i32, message = "bsd,de->bse"}> : () -> ()
    %cst_11 = arith.constant dense<0.000000e+00> : vector<2x8x32xf32>
    %9 = tpu.matmul %7, %8, %cst_11 {dimension_numbers = #tpu.dot_dimension_numbers<[2], [0], [0, 1], [1], [0, 0, 0, 1, 1, 1], [], []>} : vector<2x8x32xf32>, vector<32x32xf32>, vector<2x8x32xf32> -> vector<2x8x32xf32>
    "tpu.trace_stop"() : () -> ()
    %c0_12 = arith.constant 0 : index
    %c0_13 = arith.constant 0 : index
    %10 = vector.load %arg8[%c0_12, %c0_13] : memref<1x32xf32, #tpu.memory_space<vmem>>, vector<1x32xf32>
    %11 = vector.shape_cast %10 : vector<1x32xf32> to vector<1x1x32xf32>
    %12 = vector.broadcast %11 : vector<1x1x32xf32> to vector<2x8x32xf32>
    %13 = arith.addf %9, %12 : vector<2x8x32xf32>
    %c0_14 = arith.constant 0 : index
    %c0_15 = arith.constant 0 : index
    %c0_16 = arith.constant 0 : index
    %14 = vector.load %arg3[%c0_14, %c0_15, %c0_16] : memref<2x8x32xf32, #tpu.memory_space<vmem>>, vector<2x8x32xf32>
    %c0_17 = arith.constant 0 : index
    %c0_18 = arith.constant 0 : index
    %15 = vector.load %arg9[%c0_17, %c0_18] : memref<32x32xf32, #tpu.memory_space<vmem>>, vector<32x32xf32>
    "tpu.trace_start"() <{level = 10 : i32, message = "bsd,de->bse"}> : () -> ()
    %cst_19 = arith.constant dense<0.000000e+00> : vector<2x8x32xf32>
    %16 = tpu.matmul %14, %15, %cst_19 {dimension_numbers = #tpu.dot_dimension_numbers<[2], [0], [0, 1], [1], [0, 0, 0, 1, 1, 1], [], []>} : vector<2x8x32xf32>, vector<32x32xf32>, vector<2x8x32xf32> -> vector<2x8x32xf32>
    "tpu.trace_stop"() : () -> ()
    %c0_20 = arith.constant 0 : index
    %c0_21 = arith.constant 0 : index
    %17 = vector.load %arg10[%c0_20, %c0_21] : memref<1x32xf32, #tpu.memory_space<vmem>>, vector<1x32xf32>
    %18 = vector.shape_cast %17 : vector<1x32xf32> to vector<1x1x32xf32>
    %19 = vector.broadcast %18 : vector<1x1x32xf32> to vector<2x8x32xf32>
    %20 = arith.addf %16, %19 : vector<2x8x32xf32>
    %c0_22 = arith.constant 0 : index
    %c0_23 = arith.constant 0 : index
    %c0_24 = arith.constant 0 : index
    %21 = vector.load %arg4[%c0_22, %c0_23, %c0_24] : memref<2x8x8xi32, #tpu.memory_space<vmem>>, vector<2x8x8xi32>
    %c0_i32 = arith.constant 0 : i32
    %22 = vector.broadcast %c0_i32 : i32 to vector<2x8x8xi32>
    %23 = arith.cmpi ne, %21, %22 : vector<2x8x8xi32>
    %cst_25 = arith.constant 0.000000e+00 : f32
    %cst_26 = arith.constant -1.000000e+30 : f32
    %24 = vector.broadcast %cst_25 : f32 to vector<2x8x8xf32>
    %25 = vector.broadcast %cst_26 : f32 to vector<2x8x8xf32>
    %26 = arith.select %23, %24, %25 : vector<2x8x8xi1>, vector<2x8x8xf32>
    %c0_27 = arith.constant 0 : index
    %c0_28 = arith.constant 0 : index
    %27 = vector.load %arg12[%c0_27, %c0_28] : memref<1x32xf32, #tpu.memory_space<vmem>>, vector<1x32xf32>
    %28 = vector.shape_cast %27 : vector<1x32xf32> to vector<1x1x32xf32>
    %29 = vector.broadcast %28 : vector<1x1x32xf32> to vector<2x8x32xf32>
    %30 = vector.extract_strided_slice %6 {offsets = [0, 0, 0], sizes = [2, 8, 8], strides = [1, 1, 1]} : vector<2x8x32xf32> to vector<2x8x8xf32>
    %31 = vector.extract_strided_slice %13 {offsets = [0, 0, 0], sizes = [2, 8, 8], strides = [1, 1, 1]} : vector<2x8x32xf32> to vector<2x8x8xf32>
    %32 = vector.extract_strided_slice %20 {offsets = [0, 0, 0], sizes = [2, 8, 8], strides = [1, 1, 1]} : vector<2x8x32xf32> to vector<2x8x8xf32>
    "tpu.trace_start"() <{level = 10 : i32, message = "bqd,bkd->bqk"}> : () -> ()
    %cst_29 = arith.constant dense<0.000000e+00> : vector<2x8x8xf32>
    %33 = tpu.matmul %30, %31, %cst_29 {dimension_numbers = #tpu.dot_dimension_numbers<[2], [2], [1], [1], [0, 0, 0, 1, 1, 1], [0], [0]>} : vector<2x8x8xf32>, vector<2x8x8xf32>, vector<2x8x8xf32> -> vector<2x8x8xf32>
    "tpu.trace_stop"() : () -> ()
    %34 = arith.addf %33, %26 : vector<2x8x8xf32>
    %cst_30 = arith.constant dense<0xFF800000> : vector<2x8xf32>
    %35 = vector.multi_reduction <maximumf>, %34, %cst_30 [2] : vector<2x8x8xf32> to vector<2x8xf32>
    %36 = vector.shape_cast %35 : vector<2x8xf32> to vector<2x8x1xf32>
    %37 = vector.broadcast %36 : vector<2x8x1xf32> to vector<2x8x8xf32>
    %38 = arith.subf %34, %37 : vector<2x8x8xf32>
    %39 = math.exp %38 : vector<2x8x8xf32>
    %cst_31 = arith.constant dense<0.000000e+00> : vector<2x8xf32>
    %40 = vector.multi_reduction <add>, %39, %cst_31 [2] : vector<2x8x8xf32> to vector<2x8xf32>
    %41 = vector.shape_cast %40 : vector<2x8xf32> to vector<2x8x1xf32>
    %42 = vector.broadcast %41 : vector<2x8x1xf32> to vector<2x8x8xf32>
    %43 = arith.divf %39, %42 : vector<2x8x8xf32>
    "tpu.trace_start"() <{level = 10 : i32, message = "bqk,bkd->bqd"}> : () -> ()
    %cst_32 = arith.constant dense<0.000000e+00> : vector<2x8x8xf32>
    %44 = tpu.matmul %43, %32, %cst_32 {dimension_numbers = #tpu.dot_dimension_numbers<[2], [1], [1], [2], [0, 0, 0, 1, 1, 2], [0], [0]>} : vector<2x8x8xf32>, vector<2x8x8xf32>, vector<2x8x8xf32> -> vector<2x8x8xf32>
    "tpu.trace_stop"() : () -> ()
    %c0_33 = arith.constant 0 : index
    %c0_34 = arith.constant 0 : index
    %45 = vector.load %arg11[%c0_33, %c0_34] : memref<32x32xf32, #tpu.memory_space<vmem>>, vector<8x32xf32>
    "tpu.trace_start"() <{level = 10 : i32, message = "bqd,dn->bqn"}> : () -> ()
    %cst_35 = arith.constant dense<0.000000e+00> : vector<2x8x32xf32>
    %46 = tpu.matmul %44, %45, %cst_35 {dimension_numbers = #tpu.dot_dimension_numbers<[2], [0], [0, 1], [1], [0, 0, 0, 1, 1, 1], [], []>} : vector<2x8x8xf32>, vector<8x32xf32>, vector<2x8x32xf32> -> vector<2x8x32xf32>
    "tpu.trace_stop"() : () -> ()
    %47 = arith.addf %29, %46 : vector<2x8x32xf32>
    %48 = vector.extract_strided_slice %6 {offsets = [0, 0, 8], sizes = [2, 8, 8], strides = [1, 1, 1]} : vector<2x8x32xf32> to vector<2x8x8xf32>
    %49 = vector.extract_strided_slice %13 {offsets = [0, 0, 8], sizes = [2, 8, 8], strides = [1, 1, 1]} : vector<2x8x32xf32> to vector<2x8x8xf32>
    %50 = vector.extract_strided_slice %20 {offsets = [0, 0, 8], sizes = [2, 8, 8], strides = [1, 1, 1]} : vector<2x8x32xf32> to vector<2x8x8xf32>
    "tpu.trace_start"() <{level = 10 : i32, message = "bqd,bkd->bqk"}> : () -> ()
    %cst_36 = arith.constant dense<0.000000e+00> : vector<2x8x8xf32>
    %51 = tpu.matmul %48, %49, %cst_36 {dimension_numbers = #tpu.dot_dimension_numbers<[2], [2], [1], [1], [0, 0, 0, 1, 1, 1], [0], [0]>} : vector<2x8x8xf32>, vector<2x8x8xf32>, vector<2x8x8xf32> -> vector<2x8x8xf32>
    "tpu.trace_stop"() : () -> ()
    %52 = arith.addf %51, %26 : vector<2x8x8xf32>
    %cst_37 = arith.constant dense<0xFF800000> : vector<2x8xf32>
    %53 = vector.multi_reduction <maximumf>, %52, %cst_37 [2] : vector<2x8x8xf32> to vector<2x8xf32>
    %54 = vector.shape_cast %53 : vector<2x8xf32> to vector<2x8x1xf32>
    %55 = vector.broadcast %54 : vector<2x8x1xf32> to vector<2x8x8xf32>
    %56 = arith.subf %52, %55 : vector<2x8x8xf32>
    %57 = math.exp %56 : vector<2x8x8xf32>
    %cst_38 = arith.constant dense<0.000000e+00> : vector<2x8xf32>
    %58 = vector.multi_reduction <add>, %57, %cst_38 [2] : vector<2x8x8xf32> to vector<2x8xf32>
    %59 = vector.shape_cast %58 : vector<2x8xf32> to vector<2x8x1xf32>
    %60 = vector.broadcast %59 : vector<2x8x1xf32> to vector<2x8x8xf32>
    %61 = arith.divf %57, %60 : vector<2x8x8xf32>
    "tpu.trace_start"() <{level = 10 : i32, message = "bqk,bkd->bqd"}> : () -> ()
    %cst_39 = arith.constant dense<0.000000e+00> : vector<2x8x8xf32>
    %62 = tpu.matmul %61, %50, %cst_39 {dimension_numbers = #tpu.dot_dimension_numbers<[2], [1], [1], [2], [0, 0, 0, 1, 1, 2], [0], [0]>} : vector<2x8x8xf32>, vector<2x8x8xf32>, vector<2x8x8xf32> -> vector<2x8x8xf32>
    "tpu.trace_stop"() : () -> ()
    %c8 = arith.constant 8 : index
    %c0_40 = arith.constant 0 : index
    %63 = vector.load %arg11[%c8, %c0_40] : memref<32x32xf32, #tpu.memory_space<vmem>>, vector<8x32xf32>
    "tpu.trace_start"() <{level = 10 : i32, message = "bqd,dn->bqn"}> : () -> ()
    %cst_41 = arith.constant dense<0.000000e+00> : vector<2x8x32xf32>
    %64 = tpu.matmul %62, %63, %cst_41 {dimension_numbers = #tpu.dot_dimension_numbers<[2], [0], [0, 1], [1], [0, 0, 0, 1, 1, 1], [], []>} : vector<2x8x8xf32>, vector<8x32xf32>, vector<2x8x32xf32> -> vector<2x8x32xf32>
    "tpu.trace_stop"() : () -> ()
    %65 = arith.addf %47, %64 : vector<2x8x32xf32>
    %66 = vector.extract_strided_slice %6 {offsets = [0, 0, 16], sizes = [2, 8, 8], strides = [1, 1, 1]} : vector<2x8x32xf32> to vector<2x8x8xf32>
    %67 = vector.extract_strided_slice %13 {offsets = [0, 0, 16], sizes = [2, 8, 8], strides = [1, 1, 1]} : vector<2x8x32xf32> to vector<2x8x8xf32>
    %68 = vector.extract_strided_slice %20 {offsets = [0, 0, 16], sizes = [2, 8, 8], strides = [1, 1, 1]} : vector<2x8x32xf32> to vector<2x8x8xf32>
    "tpu.trace_start"() <{level = 10 : i32, message = "bqd,bkd->bqk"}> : () -> ()
    %cst_42 = arith.constant dense<0.000000e+00> : vector<2x8x8xf32>
    %69 = tpu.matmul %66, %67, %cst_42 {dimension_numbers = #tpu.dot_dimension_numbers<[2], [2], [1], [1], [0, 0, 0, 1, 1, 1], [0], [0]>} : vector<2x8x8xf32>, vector<2x8x8xf32>, vector<2x8x8xf32> -> vector<2x8x8xf32>
    "tpu.trace_stop"() : () -> ()
    %70 = arith.addf %69, %26 : vector<2x8x8xf32>
    %cst_43 = arith.constant dense<0xFF800000> : vector<2x8xf32>
    %71 = vector.multi_reduction <maximumf>, %70, %cst_43 [2] : vector<2x8x8xf32> to vector<2x8xf32>
    %72 = vector.shape_cast %71 : vector<2x8xf32> to vector<2x8x1xf32>
    %73 = vector.broadcast %72 : vector<2x8x1xf32> to vector<2x8x8xf32>
    %74 = arith.subf %70, %73 : vector<2x8x8xf32>
    %75 = math.exp %74 : vector<2x8x8xf32>
    %cst_44 = arith.constant dense<0.000000e+00> : vector<2x8xf32>
    %76 = vector.multi_reduction <add>, %75, %cst_44 [2] : vector<2x8x8xf32> to vector<2x8xf32>
    %77 = vector.shape_cast %76 : vector<2x8xf32> to vector<2x8x1xf32>
    %78 = vector.broadcast %77 : vector<2x8x1xf32> to vector<2x8x8xf32>
    %79 = arith.divf %75, %78 : vector<2x8x8xf32>
    "tpu.trace_start"() <{level = 10 : i32, message = "bqk,bkd->bqd"}> : () -> ()
    %cst_45 = arith.constant dense<0.000000e+00> : vector<2x8x8xf32>
    %80 = tpu.matmul %79, %68, %cst_45 {dimension_numbers = #tpu.dot_dimension_numbers<[2], [1], [1], [2], [0, 0, 0, 1, 1, 2], [0], [0]>} : vector<2x8x8xf32>, vector<2x8x8xf32>, vector<2x8x8xf32> -> vector<2x8x8xf32>
    "tpu.trace_stop"() : () -> ()
    %c16 = arith.constant 16 : index
    %c0_46 = arith.constant 0 : index
    %81 = vector.load %arg11[%c16, %c0_46] : memref<32x32xf32, #tpu.memory_space<vmem>>, vector<8x32xf32>
    "tpu.trace_start"() <{level = 10 : i32, message = "bqd,dn->bqn"}> : () -> ()
    %cst_47 = arith.constant dense<0.000000e+00> : vector<2x8x32xf32>
    %82 = tpu.matmul %80, %81, %cst_47 {dimension_numbers = #tpu.dot_dimension_numbers<[2], [0], [0, 1], [1], [0, 0, 0, 1, 1, 1], [], []>} : vector<2x8x8xf32>, vector<8x32xf32>, vector<2x8x32xf32> -> vector<2x8x32xf32>
    "tpu.trace_stop"() : () -> ()
    %83 = arith.addf %65, %82 : vector<2x8x32xf32>
    %84 = vector.extract_strided_slice %6 {offsets = [0, 0, 24], sizes = [2, 8, 8], strides = [1, 1, 1]} : vector<2x8x32xf32> to vector<2x8x8xf32>
    %85 = vector.extract_strided_slice %13 {offsets = [0, 0, 24], sizes = [2, 8, 8], strides = [1, 1, 1]} : vector<2x8x32xf32> to vector<2x8x8xf32>
    %86 = vector.extract_strided_slice %20 {offsets = [0, 0, 24], sizes = [2, 8, 8], strides = [1, 1, 1]} : vector<2x8x32xf32> to vector<2x8x8xf32>
    "tpu.trace_start"() <{level = 10 : i32, message = "bqd,bkd->bqk"}> : () -> ()
    %cst_48 = arith.constant dense<0.000000e+00> : vector<2x8x8xf32>
    %87 = tpu.matmul %84, %85, %cst_48 {dimension_numbers = #tpu.dot_dimension_numbers<[2], [2], [1], [1], [0, 0, 0, 1, 1, 1], [0], [0]>} : vector<2x8x8xf32>, vector<2x8x8xf32>, vector<2x8x8xf32> -> vector<2x8x8xf32>
    "tpu.trace_stop"() : () -> ()
    %88 = arith.addf %87, %26 : vector<2x8x8xf32>
    %cst_49 = arith.constant dense<0xFF800000> : vector<2x8xf32>
    %89 = vector.multi_reduction <maximumf>, %88, %cst_49 [2] : vector<2x8x8xf32> to vector<2x8xf32>
    %90 = vector.shape_cast %89 : vector<2x8xf32> to vector<2x8x1xf32>
    %91 = vector.broadcast %90 : vector<2x8x1xf32> to vector<2x8x8xf32>
    %92 = arith.subf %88, %91 : vector<2x8x8xf32>
    %93 = math.exp %92 : vector<2x8x8xf32>
    %cst_50 = arith.constant dense<0.000000e+00> : vector<2x8xf32>
    %94 = vector.multi_reduction <add>, %93, %cst_50 [2] : vector<2x8x8xf32> to vector<2x8xf32>
    %95 = vector.shape_cast %94 : vector<2x8xf32> to vector<2x8x1xf32>
    %96 = vector.broadcast %95 : vector<2x8x1xf32> to vector<2x8x8xf32>
    %97 = arith.divf %93, %96 : vector<2x8x8xf32>
    "tpu.trace_start"() <{level = 10 : i32, message = "bqk,bkd->bqd"}> : () -> ()
    %cst_51 = arith.constant dense<0.000000e+00> : vector<2x8x8xf32>
    %98 = tpu.matmul %97, %86, %cst_51 {dimension_numbers = #tpu.dot_dimension_numbers<[2], [1], [1], [2], [0, 0, 0, 1, 1, 2], [0], [0]>} : vector<2x8x8xf32>, vector<2x8x8xf32>, vector<2x8x8xf32> -> vector<2x8x8xf32>
    "tpu.trace_stop"() : () -> ()
    %c24 = arith.constant 24 : index
    %c0_52 = arith.constant 0 : index
    %99 = vector.load %arg11[%c24, %c0_52] : memref<32x32xf32, #tpu.memory_space<vmem>>, vector<8x32xf32>
    "tpu.trace_start"() <{level = 10 : i32, message = "bqd,dn->bqn"}> : () -> ()
    %cst_53 = arith.constant dense<0.000000e+00> : vector<2x8x32xf32>
    %100 = tpu.matmul %98, %99, %cst_53 {dimension_numbers = #tpu.dot_dimension_numbers<[2], [0], [0, 1], [1], [0, 0, 0, 1, 1, 1], [], []>} : vector<2x8x8xf32>, vector<8x32xf32>, vector<2x8x32xf32> -> vector<2x8x32xf32>
    "tpu.trace_stop"() : () -> ()
    %101 = arith.addf %83, %100 : vector<2x8x32xf32>
    %c0_54 = arith.constant 0 : index
    %c0_55 = arith.constant 0 : index
    %c0_56 = arith.constant 0 : index
    %102 = vector.load %arg13[%c0_54, %c0_55, %c0_56] : memref<2x8x32xf32, #tpu.memory_space<vmem>>, vector<2x8x32xf32>
    tpu.vector_store %arg13[%c0_54, %c0_55, %c0_56], %101 {strides = array<i32>} : memref<2x8x32xf32, #tpu.memory_space<vmem>>, vector<2x8x32xf32>,
    return
  }
  func.func @transform_0(%arg0: i32) -> (i32, i32, i32) {
    %c0_i32 = arith.constant 0 : i32
    %c0_i32_0 = arith.constant 0 : i32
    %c0_i32_1 = arith.constant 0 : i32
    %c0_i32_2 = arith.constant 0 : i32
    return %c0_i32, %c0_i32_0, %c0_i32_1 : i32, i32, i32
  }
  func.func @transform_1(%arg0: i32) -> (i32, i32, i32) {
    %c0_i32 = arith.constant 0 : i32
    %c0_i32_0 = arith.constant 0 : i32
    %c0_i32_1 = arith.constant 0 : i32
    %c0_i32_2 = arith.constant 0 : i32
    return %c0_i32, %c0_i32_0, %c0_i32_1 : i32, i32, i32
  }
  func.func @transform_2(%arg0: i32) -> (i32, i32, i32) {
    %c0_i32 = arith.constant 0 : i32
    %c0_i32_0 = arith.constant 0 : i32
    %c0_i32_1 = arith.constant 0 : i32
    %c0_i32_2 = arith.constant 0 : i32
    return %c0_i32, %c0_i32_0, %c0_i32_1 : i32, i32, i32
  }
  func.func @transform_3(%arg0: i32) -> (i32, i32, i32) {
    %c0_i32 = arith.constant 0 : i32
    %c0_i32_0 = arith.constant 0 : i32
    %c0_i32_1 = arith.constant 0 : i32
    %c0_i32_2 = arith.constant 0 : i32
    return %c0_i32, %c0_i32_0, %c0_i32_1 : i32, i32, i32
  }
  func.func @transform_4(%arg0: i32) -> (i32, i32) {
    %c0_i32 = arith.constant 0 : i32
    %c0_i32_0 = arith.constant 0 : i32
    %c0_i32_1 = arith.constant 0 : i32
    return %c0_i32, %c0_i32_0 : i32, i32
  }
  func.func @transform_5(%arg0: i32) -> (i32, i32) {
    %c0_i32 = arith.constant 0 : i32
    %c0_i32_0 = arith.constant 0 : i32
    %c0_i32_1 = arith.constant 0 : i32
    return %c0_i32, %c0_i32_0 : i32, i32
  }
  func.func @transform_6(%arg0: i32) -> (i32, i32) {
    %c0_i32 = arith.constant 0 : i32
    %c0_i32_0 = arith.constant 0 : i32
    %c0_i32_1 = arith.constant 0 : i32
    return %c0_i32, %c0_i32_0 : i32, i32
  }
  func.func @transform_7(%arg0: i32) -> (i32, i32) {
    %c0_i32 = arith.constant 0 : i32
    %c0_i32_0 = arith.constant 0 : i32
    %c0_i32_1 = arith.constant 0 : i32
    return %c0_i32, %c0_i32_0 : i32, i32
  }
  func.func @transform_8(%arg0: i32) -> (i32, i32) {
    %c0_i32 = arith.constant 0 : i32
    %c0_i32_0 = arith.constant 0 : i32
    %c0_i32_1 = arith.constant 0 : i32
    return %c0_i32, %c0_i32_0 : i32, i32
  }
  func.func @transform_9(%arg0: i32) -> (i32, i32) {
    %c0_i32 = arith.constant 0 : i32
    %c0_i32_0 = arith.constant 0 : i32
    %c0_i32_1 = arith.constant 0 : i32
    return %c0_i32, %c0_i32_0 : i32, i32
  }
  func.func @transform_10(%arg0: i32) -> (i32, i32) {
    %c0_i32 = arith.constant 0 : i32
    %c0_i32_0 = arith.constant 0 : i32
    %c0_i32_1 = arith.constant 0 : i32
    return %c0_i32, %c0_i32_0 : i32, i32
  }
  func.func @transform_11(%arg0: i32) -> (i32, i32) {
    %c0_i32 = arith.constant 0 : i32
    %c0_i32_0 = arith.constant 0 : i32
    %c0_i32_1 = arith.constant 0 : i32
    return %c0_i32, %c0_i32_0 : i32, i32
  }
  func.func @transform_12(%arg0: i32) -> (i32, i32, i32) {
    %c0_i32 = arith.constant 0 : i32
    %c0_i32_0 = arith.constant 0 : i32
    %c0_i32_1 = arith.constant 0 : i32
    %c0_i32_2 = arith.constant 0 : i32
    return %c0_i32, %c0_i32_0, %c0_i32_1 : i32, i32, i32
  }
}

</mosaic_0001>

<bundles_post_ra>
// kernel: tpu_custom_call.1
= control target key start
LH: loop header
LB: loop body
LE: loop exit
PB: predicated region body
PF: predicated region fallthrough
CT: control target
= control target key end

     0   :  { %17 = vsyncpa [#allocation3], 0  ;;  %s2927_s0 = inlined_call_operand.hbm [shape: f32[2,8,32], index: 0, kind: input, shape index: {}]   ;;  %s2928_s1 = inlined_call_operand.hbm [shape: f32[2,8,32], index: 1, kind: input, shape index: {}]   ;;  %s2929_s2 = inlined_call_operand.hbm [shape: f32[2,8,32], index: 2, kind: input, shape index: {}]   ;;  %s2930_s3 = inlined_call_operand.hbm [shape: s32[2,8,8], index: 3, kind: input, shape index: {}]   ;;  %s2931_s4 = inlined_call_operand.hbm [shape: f32[32,32], index: 4, kind: input, shape index: {}]   ;;  %s2932_s5 = inlined_call_operand.vmem [shape: f32[1,32], index: 5, kind: input, shape index: {}]   ;;  %s2933_s6 = inlined_call_operand.hbm [shape: f32[32,32], index: 6, kind: input, shape index: {}]   ;;  %s2934_s7 = inlined_call_operand.vmem [shape: f32[1,32], index: 7, kind: input, shape index: {}]   ;;  %s2935_s8 = inlined_call_operand.hbm [shape: f32[32,32], index: 8, kind: input, shape index: {}]   ;;  %s2936_s9 = inlined_call_operand.vmem [shape: f32[1,32], index: 9, kind: input, shape index: {}]   ;;  %s2937_s10 = inlined_call_operand.hbm [shape: f32[32,32], index: 10, kind: input, shape index: {}]   ;;  %s2938_s11 = inlined_call_operand.vmem [shape: f32[1,32], index: 11, kind: input, shape index: {}]   ;;  %s2939_s12 = inlined_call_operand.hbm [shape: f32[2,8,32], index: 12, kind: output, shape index: {}]  }
   0x1   :  { %18 = vsyncpa [#allocation6], 0 }
   0x2   :  { %19 = vsyncpa [#allocation9], 0 }
   0x3   :  { %20 = vsyncpa [#allocation12], 0 }
   0x4   :  { %21 = vsyncpa [#allocation15], 0 }
   0x5   :  { %22 = vsyncpa [#allocation4], 0  ;;  %s2597_s21 = smov [#allocation5]   ;;  %s2598_s23 = smov [#allocation8]  }
   0x6   :  { %s40_s22 = sshll.u32 %s2597_s21, 4  ;;  %s64_s24 = sshll.u32 %s2598_s23, 4  ;;  %s41_s22 = int_to_ptr.vmem [resolvable:$true] %s40_s22  ;;  %s65_s24 = int_to_ptr.vmem [resolvable:$true] %s64_s24 }
   0x7   :  { %s2413_s25 = scalar_lea.vmem %s41_s22, 256  ;;  %p2418_p1 = scmp.lt.s32.totalorder %s41_s22, %s41_s22 }
   0x8   :  { %p2414_p0 = scmp.ne.s32.totalorder %s41_s22, %s2413_s25  ;;  %p2419_p2 = scmp.lt.s32.totalorder %s2413_s25, %s2413_s25 }
   0xa   :  { %p2420_p3 = por %p2419_p2, %p2418_p1 }
   0xc   :  { %p2421_p4 = pnand %p2420_p3, %p2414_p0 }
   0xe   :  { %2424 = shalt.err (!%p2421_p4)
}
   0xf   :  { %s2599_s26 = smov 128   ;;  %s2600_s27 = smov 8  }
  0x10   :  { %46 = dma.hbm_to_vmem [thread:$0]  %s2928_s1, 256, %s41_s22, [#allocation6], %s2599_s26, %s2599_s26, %s2600_s27  }
  0x11   :  { %s2433_s30 = scalar_lea.vmem %s65_s24, 256  ;;  %p2438_p6 = scmp.lt.s32.totalorder %s65_s24, %s65_s24 }
  0x12   :  { %p2434_p5 = scmp.ne.s32.totalorder %s65_s24, %s2433_s30  ;;  %p2439_p7 = scmp.lt.s32.totalorder %s2433_s30, %s2433_s30 }
  0x14   :  { %p2440_p8 = por %p2439_p7, %p2438_p6 }
  0x16   :  { %p2441_p9 = pnand %p2440_p8, %p2434_p5 }
  0x18   :  { %2444 = shalt.err (!%p2441_p9)
}
  0x19   :  { %70 = dma.hbm_to_vmem [thread:$0]  %s2930_s3, 256, %s65_s24, [#allocation9], %s2599_s26, %s2599_s26, %s2600_s27  }
  0x1a   :  { %s2601_s15 = smov [#allocation11]   ;;  %s2602_s17 = smov [#allocation2]  }
  0x1b   :  { %s90_s16 = sshll.u32 %s2601_s15, 4  ;;  %s28_s18 = sshll.u32 %s2602_s17, 4  ;;  %s91_s16 = int_to_ptr.vmem [resolvable:$true] %s90_s16  ;;  %s29_s18 = int_to_ptr.vmem [resolvable:$true] %s28_s18 }
  0x1c   :  { %s2453_s1 = scalar_lea.vmem %s91_s16, 512  ;;  %p2458_p11 = scmp.lt.s32.totalorder %s91_s16, %s91_s16 }
  0x1d   :  { %p2454_p10 = scmp.ne.s32.totalorder %s91_s16, %s2453_s1  ;;  %p2459_p12 = scmp.lt.s32.totalorder %s2453_s1, %s2453_s1 }
  0x1f   :  { %p2460_p13 = por %p2459_p12, %p2458_p11 }
  0x21   :  { %p2461_p0 = pnand %p2460_p13, %p2454_p10 }
  0x23   :  { %2464 = shalt.err (!%p2461_p0)
}
  0x24   :  { %96 = dma.hbm_to_vmem [thread:$0]  %s2933_s6, 512, %s91_s16, [#allocation12], %s2599_s26, %s2599_s26, %s2600_s27  }
  0x25   :  { %s2473_s3 = scalar_lea.vmem %s29_s18, 256  ;;  %p2478_p2 = scmp.lt.s32.totalorder %s29_s18, %s29_s18 }
  0x26   :  { %p2474_p1 = scmp.ne.s32.totalorder %s29_s18, %s2473_s3  ;;  %p2479_p3 = scmp.lt.s32.totalorder %s2473_s3, %s2473_s3 }
  0x28   :  { %p2480_p4 = por %p2479_p3, %p2478_p2 }
  0x2a   :  { %p2481_p5 = pnand %p2480_p4, %p2474_p1 }
  0x2c   :  { %2484 = shalt.err (!%p2481_p5)
}
  0x2d   :  { %34 = dma.hbm_to_vmem [thread:$0]  %s2927_s0, 256, %s29_s18, [#allocation3], %s2599_s26, %s2599_s26, %s2600_s27  }
  0x2e   :  { %s2603_s23 = smov [#allocation7]   ;;  %s2604_s25 = smov [#allocation10]  }
  0x2f   :  { %s52_s24 = sshll.u32 %s2603_s23, 4  ;;  %s76_s28 = sshll.u32 %s2604_s25, 4  ;;  %s53_s24 = int_to_ptr.vmem [resolvable:$true] %s52_s24  ;;  %s77_s28 = int_to_ptr.vmem [resolvable:$true] %s76_s28 }
  0x30   :  { %s2493_s6 = scalar_lea.vmem %s53_s24, 256  ;;  %p2498_p7 = scmp.lt.s32.totalorder %s53_s24, %s53_s24 }
  0x31   :  { %p2494_p6 = scmp.ne.s32.totalorder %s53_s24, %s2493_s6  ;;  %p2499_p8 = scmp.lt.s32.totalorder %s2493_s6, %s2493_s6 }
  0x33   :  { %p2500_p9 = por %p2499_p8, %p2498_p7 }
  0x35   :  { %p2501_p10 = pnand %p2500_p9, %p2494_p6 }
  0x37   :  { %2504 = shalt.err (!%p2501_p10)
}
  0x38   :  { %58 = dma.hbm_to_vmem [thread:$0]  %s2929_s2, 256, %s53_s24, [#allocation6], %s2599_s26, %s2599_s26, %s2600_s27  }
  0x39   :  { %s2513_s0 = scalar_lea.vmem %s77_s28, 512  ;;  %p2518_p12 = scmp.lt.s32.totalorder %s77_s28, %s77_s28 }
  0x3a   :  { %p2514_p11 = scmp.ne.s32.totalorder %s77_s28, %s2513_s0  ;;  %p2519_p13 = scmp.lt.s32.totalorder %s2513_s0, %s2513_s0 }
  0x3c   :  { %p2520_p0 = por %p2519_p13, %p2518_p12 }
  0x3e   :  { %p2521_p1 = pnand %p2520_p0, %p2514_p11 }
  0x40   :  { %2524 = shalt.err (!%p2521_p1)
}
  0x41   :  { %82 = dma.hbm_to_vmem [thread:$0]  %s2931_s4, 512, %s77_s28, [#allocation9], %s2599_s26, %s2599_s26, %s2600_s27  }
  0x42   :  { %s2605_s15 = smov [#allocation13]   ;;  %s2606_s17 = smov [#allocation14]  }
  0x43   :  { %s104_s16 = sshll.u32 %s2605_s15, 4  ;;  %s118_s18 = sshll.u32 %s2606_s17, 4  ;;  %s105_s16 = int_to_ptr.vmem [resolvable:$true] %s104_s16  ;;  %s119_s18 = int_to_ptr.vmem [resolvable:$true] %s118_s18 }
  0x44   :  { %s2533_s2 = scalar_lea.vmem %s105_s16, 512  ;;  %p2538_p3 = scmp.lt.s32.totalorder %s105_s16, %s105_s16 }
  0x45   :  { %p2534_p2 = scmp.ne.s32.totalorder %s105_s16, %s2533_s2  ;;  %p2539_p4 = scmp.lt.s32.totalorder %s2533_s2, %s2533_s2 }
  0x47   :  { %p2540_p5 = por %p2539_p4, %p2538_p3 }
  0x49   :  { %p2541_p6 = pnand %p2540_p5, %p2534_p2 }
  0x4b   :  { %2544 = shalt.err (!%p2541_p6)
}
  0x4c   :  { %110 = dma.hbm_to_vmem [thread:$0]  %s2935_s8, 512, %s105_s16, [#allocation12], %s2599_s26, %s2599_s26, %s2600_s27  }
  0x4d   :  { %s2553_s4 = scalar_lea.vmem %s119_s18, 512  ;;  %p2558_p8 = scmp.lt.s32.totalorder %s119_s18, %s119_s18 }
  0x4e   :  { %p2554_p7 = scmp.ne.s32.totalorder %s119_s18, %s2553_s4  ;;  %p2559_p9 = scmp.lt.s32.totalorder %s2553_s4, %s2553_s4 }
  0x50   :  { %p2560_p10 = por %p2559_p9, %p2558_p8 }
  0x52   :  { %p2561_p11 = pnand %p2560_p10, %p2554_p7 }
  0x54   :  { %2564 = shalt.err (!%p2561_p11)
}
  0x55   :  { %124 = dma.hbm_to_vmem [thread:$0]  %s2937_s10, 512, %s119_s18, [#allocation15], %s2599_s26, %s2599_s26, %s2600_s27  }
  0x56   :  { %2585 = dma.done.wait [#allocation3], 256  }
  0x57   :  { %2586 = vsyncadd [#allocation3], 4294967040 }
  0x58   :  { %2587 = dma.done.wait [#allocation6], 512  }
  0x59   :  { %2588 = vsyncadd [#allocation6], 4294966784 }
  0x5a   :  { %2589 = dma.done.wait [#allocation9], 768  }
  0x5b   :  { %2590 = vsyncadd [#allocation9], 4294966528 }
  0x5c   :  { %2591 = dma.done.wait [#allocation12], 1024  }
  0x5d   :  { %2592 = vsyncadd [#allocation12], 4294966272 }
  0x5e   :  { %2593 = dma.done.wait [#allocation15], 512  }
  0x5f   :  { %2594 = vsyncadd [#allocation15], 4294966784  ;;  %v251_v0 = vld [vmem:[#allocation11 + $0x18] sm:$0xff]  ;;  %v250_v2 = vld [vmem:[#allocation11 + $0x10] sm:$0xff]  ;;  %vm164_vm0 = vcmask 261120   ;;  %v2607_v12 = vmov 0.0  }
  0x60   :  { %v156_v1 = vld [vmem:[#allocation10 + $0x18] sm:$0xff]  ;;  %2234 = vmatprep.subr.mxu1 %v251_v0  ;;  %v155_v3 = vld [vmem:[#allocation10 + $0x10] sm:$0xff]  ;;  %v249_v4 = vld [vmem:[#allocation11 + $0x8] sm:$0xff]  ;;  %vm2608_vm1 = vmmov 0   ;;  %vm447_vm2 = vcmask 64512   ;;  %s2613_s28 = smov [#allocation16]  }
  0x61   :  { %2223 = vmatprep.subr.mxu0 %v156_v1  ;;  %2235 = vmatpush3.msra.mxu1 %v251_v0  ;;  %v154_v5 = vld [vmem:[#allocation10 + $0x8] sm:$0xff]  ;;  %v248_v6 = vld [vmem:[#allocation11] sm:$0xff]  ;;  %v246_v7 = vld [vmem:[#allocation5] sm:$0xff]  ;;  %v2609_v31 = vmov -1e+30   ;;  %s2103_s6 = sshll.u32 %s2613_s28, 4  ;;  %s2104_s6 = int_to_ptr.vmem [resolvable:$true] %s2103_s6 }
  0x62   :  { %2224 = vmatpush3.msra.mxu0 %v156_v1  ;;  %2236 = vmatprep.subr.mxu1 %v250_v2  ;;  %v153_v8 = vld [vmem:[#allocation10] sm:$0xff]  ;;  %v247_v9 = vld [vmem:[#allocation5 + $0x8] sm:$0xff]  ;;  %v152_v11 = vld [vmem:[#allocation2 + $0x8] sm:$0xff]  ;;  %s2565_s29 = scalar_lea.vmem %s2104_s6, 256  ;;  %p2570_p13 = scmp.lt.s32.totalorder %s2104_s6, %s2104_s6 }
  0x63   :  { %2225 = vmatprep.subr.mxu0 %v155_v3  ;;  %2237 = vmatpush3.msra.mxu1 %v250_v2  ;;  %v151_v10 = vld [vmem:[#allocation2] sm:$0xff]  ;;  %v345_v23 = vld [vmem:[#allocation13 + $0x18] sm:$0xff]  ;;  %v344_v24 = vld [vmem:[#allocation13 + $0x10] sm:$0xff]  ;;  %p2566_p12 = scmp.ne.s32.totalorder %s2104_s6, %s2565_s29  ;;  %p2571_p0 = scmp.lt.s32.totalorder %s2565_s29, %s2565_s29 }
  0x64   :  { %2226 = vmatpush3.msra.mxu0 %v155_v3  ;;  %2238 = vmatprep.subr.mxu1 %v249_v4  ;;  %v2122_v14 = vld [vmem:[%s2934_s7] ss:$0 sm:$0xff]  ;;  %v343_v26 = vld [vmem:[#allocation13 + $0x8] sm:$0xff]  ;;  %v434_v29 = vld [vmem:[#allocation8] sm:$0xff] }
  0x65   :  { %2227 = vmatprep.subr.mxu0 %v154_v5  ;;  %2239 = vmatpush3.msra.mxu1 %v249_v4  ;;  %v2119_v17 = vld [vmem:[%s2932_s5] ss:$0 sm:$0xff]  ;;  %v341_v28 = vld [vmem:[#allocation7 + $0x8] sm:$0xff]  ;;  %vm436_vm3 = vcmp.ne.s32.totalorder %v434_v29, 0  ;;  %v435_v30 = vld [vmem:[#allocation8 + $0x8] sm:$0xff]  ;;  %s2610_s5 = smov 120   ;;  %p2572_p1 = por %p2571_p0, %p2570_p13 }
  0x66   :  { %2228 = vmatpush3.msra.mxu0 %v154_v5  ;;  %2240 = vmatprep.subr.mxu1 %v248_v6  ;;  %v340_v25 = vld [vmem:[#allocation7] sm:$0xff]  ;;  %v2767_v32 = vsel %vm436_vm3, 0.0, %v2609_v31  ;;  %vm437_vm4 = vcmp.ne.s32.totalorder %v435_v30, 0 }
  0x67   :  { %2242 = vmatprep.mubr.msk.f32.mxu1 %vm164_vm0, %v246_v7  ;;  %2241 = vmatpush3.msra.mxu1 %v248_v6  ;;  %v342_v27 = vld [vmem:[#allocation13] sm:$0xff]  ;;  %v2770_v36 = vsel %vm437_vm4, 0.0, %v2609_v31  ;;  %p2573_p2 = pnand %p2572_p1, %p2566_p12 }
  0x68   :  { %2229 = vmatprep.subr.mxu0 %v153_v8  ;;  %2243 = vmatmul.mubr.msk.f32.vlgmr.msra.gmra.mxu1 %vm164_vm0, %v247_v9  ;;  %v2125_v53 = vld [vmem:[%s2936_s9] ss:$0 sm:$0xff]  ;;  %s2611_s9 = smov 112  }
  0x69   :  { %2230 = vmatpush3.msra.mxu0 %v153_v8  ;;  %2231 = vmatprep.mubr.msk.f32.mxu0 %vm164_vm0, %v151_v10  ;;  %v768_v2 = vld [vmem:[#allocation14] sm:$0xff] }
  0x6a   :  { %2232 = vmatmul.mubr.msk.f32.vlgmr.msra.gmra.mxu0 %vm164_vm0, %v152_v11  ;;  %2256 = vmatprep.subr.mxu1 %v2607_v12 }
  0x6b   :  { %2258 = vmatprep.mubr.msk.f32.mxu1 %vm2608_vm1, %v2607_v12  ;;  %2245 = vmatprep.subr.mxu0 %v345_v23 }
  0x6c   :  { %2246 = vmatpush3.msra.mxu0 %v345_v23  ;;  %2253 = vmatprep.mubr.msk.f32.mxu0 %vm164_vm0, %v340_v25 }
  0x6d   :  { %2247 = vmatprep.subr.mxu0 %v344_v24 }
  0x6e   :  { %2248 = vmatpush3.msra.mxu0 %v344_v24 }
  0x6f   :  { %2249 = vmatprep.subr.mxu0 %v343_v26 }
  0x70   :  { %2250 = vmatpush3.msra.mxu0 %v343_v26 }
  0x71   :  { %2251 = vmatprep.subr.mxu0 %v342_v27 }
  0x72   :  { %2252 = vmatpush3.msra.mxu0 %v342_v27 }
  0x73   :  { %2254 = vmatmul.mubr.msk.f32.vlgmr.msra.gmra.mxu0 %vm164_vm0, %v341_v28  ;;  %2266 = vmatprep.subr.mxu0 %v2607_v12 }
  0x74   :  { %2268 = vmatprep.mubr.msk.f32.mxu0 %vm2608_vm1, %v2607_v12 }
 0x128   :  { %v2244_v13 = vpop.f32.mrf.mxu1 }
 0x129   :  { %v2747_v21 = vadd.f32 %v2244_v13, %v2122_v14 }
 0x12a   :  { %v2233_v15 = vpop.f32.mrf.mxu0  ;;  %v331_v16 = vpop.f32.mrf.mxu1 }
 0x12b   :  { %v2740_v18 = vadd.f32 %v2122_v14, %v331_v16  ;;  %v2755_v22 = vadd.f32 %v2233_v15, %v2119_v17 }
 0x12c   :  { %v237_v19 = vpop.f32.mrf.mxu0 }
 0x12d   :  { %2257 = vmatpush3.xpose.msk.msra.mxu1 %vm447_vm2, %v2740_v18  ;;  %v2744_v20 = vadd.f32 %v2119_v17, %v237_v19 }
 0x12e   :  { %2261 = vmatprep.subr.mxu1 %v2607_v12 }
 0x130   :  { %2259 = vmatmul.mubr.msk.f32.vlgmr.msra.gmra.mxu1 %vm447_vm2, %v2744_v20 }
 0x131   :  { %2262 = vmatpush3.xpose.msk.msra.mxu1 %vm447_vm2, %v2747_v21  ;;  %2263 = vmatprep.mubr.msk.f32.mxu1 %vm2608_vm1, %v2607_v12 }
 0x132   :  { %2271 = vmatprep.subr.mxu1 %v2607_v12 }
 0x133   :  { %v2255_v52 = vpop.f32.mrf.mxu0 }
 0x134   :  { %2264 = vmatmul.mubr.msk.f32.vlgmr.msra.gmra.mxu1 %vm447_vm2, %v2755_v22  ;;  %v2782_v54 = vadd.f32 %v2255_v52, %v2125_v53 }
 0x135   :  { %2273 = vmatprep.mubr.msk.f32.mxu1 %vm2608_vm1, %v2607_v12  ;;  %v425_v55 = vpop.f32.mrf.mxu0 }
 0x136   :  { %v2784_v56 = vadd.f32 %v2125_v53, %v425_v55  ;;  %2272 = vmatpush3.msra.mxu1 %v2782_v54 }
 0x137   :  { %2281 = vmatprep.subr.mxu1 %v2607_v12 }
 0x138   :  { %2267 = vmatpush3.msra.mxu0 %v2784_v56 }
 0x139   :  { %2276 = vmatprep.subr.mxu0 %v768_v2 }
 0x1f0   :  { %v520_v33 = vpop.f32.mrf.mxu1 }
 0x1f1   :  { %v521_v34 = vadd.f32 %v520_v33, %v2767_v32 }
 0x1f2   :  { %v2260_v35 = vpop.f32.mrf.mxu1 }
 0x1f3   :  { %v600_v37 = vsel %vm447_vm2, %v521_v34, -inf }
 0x1f4   :  { %601 = vmax.xlane.f32.xlu0 %v600_v37  ;;  %v596_v38 = vpop.f32.mrf.mxu1 }
 0x1f5   :  { %v597_v39 = vadd.f32 %v596_v38, %v2770_v36 }
 0x1f6   :  { %v2265_v40 = vpop.f32.mrf.mxu1 }
 0x1f7   :  { %v603_v41 = vsel %vm447_vm2, %v597_v39, -inf }
 0x1f8   :  { %604 = vmax.xlane.f32.xlu0 %v603_v41 }
 0x20e   :  { %854 = vrot.lane.b32.xlu0 %v2740_v18, %s2610_s5 }
 0x27d   :  { %v602_v42 = vpop.xlane.xlu0 %601 }
 0x27e   :  { %v606_v43 = vsub.f32 %v521_v34, %v602_v42 }
 0x280   :  { %v608_v44 = vmul.f32 1.442695, %v606_v43 }
 0x281   :  { %v605_v45 = vpop.xlane.xlu0 %604 }
 0x282   :  { %2373 = vpow2.f32 %v608_v44  ;;  %v607_v46 = vsub.f32 %v597_v39, %v605_v45  ;;  %v1184_v45 = vld [vmem:[#allocation14 + $0x8] sm:$0xff] }
 0x284   :  { %v610_v47 = vmul.f32 1.442695, %v607_v46 }
 0x285   :  { %v855_v0 = vpop.permute.xlu0 %854 }
 0x286   :  { %2375 = vpow2.f32 %v610_v47 }
 0x28f   :  { %v2374_v48 = vpop.eup %2373 }
 0x290   :  { %v612_v49 = vsel %vm447_vm2, %v2374_v48, 0.0 }
 0x291   :  { %613 = vadd.xlane.f32.xlu1 %v612_v49 }
 0x293   :  { %v2376_v50 = vpop.eup %2375 }
 0x294   :  { %v615_v51 = vsel %vm447_vm2, %v2376_v50, 0.0 }
 0x295   :  { %616 = vadd.xlane.f32.xlu1 %v615_v51 }
 0x2a6   :  { %932 = vrot.lane.b32.xlu1 %v2747_v21, %s2610_s5 }
 0x2aa   :  { %852 = vrot.lane.b32.xlu1 %v2744_v20, %s2610_s5 }
 0x2ae   :  { %930 = vrot.lane.b32.xlu1 %v2755_v22, %s2610_s5 }
 0x31a   :  { %v614_v57 = vpop.xlane.xlu1 %613 }
 0x31b   :  { %2377 = vrcp.f32 %v614_v57 }
 0x31e   :  { %v617_v58 = vpop.xlane.xlu1 %616 }
 0x31f   :  { %2379 = vrcp.f32 %v617_v58 }
 0x322   :  { %v933_v62 = vpop.permute.xlu1 %932 }
 0x326   :  { %v853_v1 = vpop.permute.xlu1 %852 }
 0x328   :  { %v2378_v59 = vpop.eup %2377 }
 0x329   :  { %v619_v60 = vmul.f32 %v2378_v59, %v2374_v48 }
 0x32a   :  { %v931_v7 = vpop.permute.xlu1 %930 }
 0x32b   :  { %2269 = vmatmul.mubr.msk.f32.vlgmr.msra.gmra.mxu0 %vm447_vm2, %v619_v60 }
 0x32c   :  { %v2380_v61 = vpop.eup %2379  ;;  %2277 = vmatpush3.msra.mxu0 %v768_v2 }
 0x32d   :  { %v621_v63 = vmul.f32 %v2380_v61, %v2376_v50  ;;  %2286 = vmatprep.subr.mxu0 %v2607_v12 }
 0x32f   :  { %2274 = vmatmul.mubr.msk.f32.vlgmr.msra.gmra.mxu1 %vm447_vm2, %v621_v63  ;;  %v2128_v63 = vld [vmem:[%s2938_s11] ss:$0 sm:$0xff]  ;;  %s2612_s11 = smov 104  }
 0x330   :  { %2282 = vmatpush3.xpose.msk.msra.mxu1 %vm447_vm2, %v855_v0  ;;  %2283 = vmatprep.mubr.msk.f32.mxu1 %vm2608_vm1, %v2607_v12 }
 0x331   :  { %2291 = vmatprep.subr.mxu1 %v2607_v12 }
 0x333   :  { %2284 = vmatmul.mubr.msk.f32.vlgmr.msra.gmra.mxu1 %vm447_vm2, %v853_v1 }
 0x334   :  { %2293 = vmatprep.mubr.msk.f32.mxu1 %vm2608_vm1, %v2607_v12 }
 0x3eb   :  { %v691_v3 = vpop.f32.mrf.mxu0 }
 0x3ec   :  { %2278 = vmatprep.mubr.msk.f32.mxu0 %vm447_vm2, %v691_v3 }
 0x3ed   :  { %v2270_v4 = vpop.f32.mrf.mxu0 }
 0x3ef   :  { %v764_v5 = vpop.f32.mrf.mxu1 }
 0x3f0   :  { %2279 = vmatmul.mubr.msk.f32.vlgmr.msra.gmra.mxu0 %vm447_vm2, %v764_v5 }
 0x3f1   :  { %2287 = vmatpush3.xpose.msk.msra.mxu0 %vm447_vm2, %v933_v62  ;;  %v2275_v6 = vpop.f32.mrf.mxu1  ;;  %2288 = vmatprep.mubr.msk.f32.mxu0 %vm2608_vm1, %v2607_v12 }
 0x3f2   :  { %2296 = vmatprep.subr.mxu0 %v2607_v12 }
 0x3f3   :  { %v926_v8 = vpop.f32.mrf.mxu1 }
 0x3f4   :  { %v927_v9 = vadd.f32 %v926_v8, %v2767_v32  ;;  %2289 = vmatmul.mubr.msk.f32.vlgmr.msra.gmra.mxu0 %vm447_vm2, %v931_v7 }
 0x3f5   :  { %v2285_v10 = vpop.f32.mrf.mxu1  ;;  %2298 = vmatprep.mubr.msk.f32.mxu0 %vm2608_vm1, %v2607_v12 }
 0x3f6   :  { %v1008_v11 = vsel %vm447_vm2, %v927_v9, -inf }
 0x3f7   :  { %1009 = vmax.xlane.f32.xlu0 %v1008_v11 }
 0x480   :  { %v1010_v13 = vpop.xlane.xlu0 %1009 }
 0x481   :  { %v1014_v14 = vsub.f32 %v927_v9, %v1010_v13 }
 0x483   :  { %v1016_v15 = vmul.f32 1.442695, %v1014_v14 }
 0x485   :  { %2381 = vpow2.f32 %v1016_v15 }
 0x492   :  { %v2382_v16 = vpop.eup %2381 }
 0x493   :  { %v1020_v17 = vsel %vm447_vm2, %v2382_v16, 0.0 }
 0x494   :  { %1021 = vadd.xlane.f32.xlu0 %v1020_v17 }
 0x4b0   :  { %v2817_v19 = vpop.f32.mrf.mxu0 }
 0x4b1   :  { %v851_v0 = vadd.f32 %v2817_v19, %v2128_v63 }
 0x4b2   :  { %v2819_v23 = vpop.f32.mrf.mxu0 }
 0x4b3   :  { %v850_v2 = vadd.f32 %v2128_v63, %v2819_v23  ;;  %v2012_v63 = vld [vmem:[#allocation14 + $0x18] sm:$0xff] }
 0x4b4   :  { %v1004_v24 = vpop.f32.mrf.mxu0 }
 0x4b5   :  { %v1005_v25 = vadd.f32 %v1004_v24, %v2770_v36 }
 0x4b6   :  { %v2290_v26 = vpop.f32.mrf.mxu0 }
 0x4b7   :  { %v1011_v27 = vsel %vm447_vm2, %v1005_v25, -inf  ;;  %v1598_v26 = vld [vmem:[#allocation14 + $0x10] sm:$0xff] }
 0x4b8   :  { %1012 = vmax.xlane.f32.xlu1 %v1011_v27 }
 0x4c9   :  { %1108 = vrot.lane.b32.xlu1 %v2782_v54, %s2610_s5 }
 0x4cd   :  { %1270 = vrot.lane.b32.xlu1 %v2740_v18, %s2611_s9 }
 0x4d1   :  { %1348 = vrot.lane.b32.xlu1 %v2747_v21, %s2611_s9 }
 0x4d5   :  { %1346 = vrot.lane.b32.xlu1 %v2755_v22, %s2611_s9 }
 0x51d   :  { %v1022_v35 = vpop.xlane.xlu0 %1021 }
 0x541   :  { %v1013_v28 = vpop.xlane.xlu1 %1012 }
 0x542   :  { %v1015_v29 = vsub.f32 %v1005_v25, %v1013_v28 }
 0x544   :  { %v1018_v30 = vmul.f32 1.442695, %v1015_v29 }
 0x545   :  { %v1109_v31 = vpop.permute.xlu1 %1108 }
 0x546   :  { %2383 = vpow2.f32 %v1018_v30  ;;  %2297 = vmatpush3.msra.mxu0 %v1109_v31 }
 0x547   :  { %2306 = vmatprep.subr.mxu0 %v2607_v12  ;;  %2385 = vrcp.f32 %v1022_v35 }
 0x549   :  { %v1271_v43 = vpop.permute.xlu1 %1270 }
 0x54d   :  { %v1349_v48 = vpop.permute.xlu1 %1348 }
 0x551   :  { %v1347_v51 = vpop.permute.xlu1 %1346 }
 0x553   :  { %v2384_v33 = vpop.eup %2383 }
 0x554   :  { %v1023_v34 = vsel %vm447_vm2, %v2384_v33, 0.0  ;;  %v2386_v38 = vpop.eup %2385 }
 0x555   :  { %1024 = vadd.xlane.f32.xlu0 %v1023_v34  ;;  %v1027_v40 = vmul.f32 %v2386_v38, %v2382_v16 }
 0x56b   :  { %1031 = vrot.lane.b32.xlu0 %v2784_v56, %s2610_s5 }
 0x56f   :  { %1268 = vrot.lane.b32.xlu0 %v2744_v20, %s2611_s9 }
 0x5de   :  { %v1025_v37 = vpop.xlane.xlu0 %1024 }
 0x5df   :  { %2387 = vrcp.f32 %v1025_v37 }
 0x5e2   :  { %v1032_v39 = vpop.permute.xlu0 %1031 }
 0x5e3   :  { %2292 = vmatpush3.msra.mxu1 %v1032_v39 }
 0x5e4   :  { %2294 = vmatmul.mubr.msk.f32.vlgmr.msra.gmra.mxu1 %vm447_vm2, %v1027_v40  ;;  %2301 = vmatprep.subr.mxu1 %v1184_v45 }
 0x5e5   :  { %2302 = vmatpush3.msra.mxu1 %v1184_v45 }
 0x5e6   :  { %v1269_v44 = vpop.permute.xlu0 %1268  ;;  %2311 = vmatprep.subr.mxu1 %v2607_v12 }
 0x5ec   :  { %v2388_v41 = vpop.eup %2387 }
 0x5ed   :  { %v1029_v42 = vmul.f32 %v2388_v41, %v2384_v33 }
 0x5ef   :  { %2299 = vmatmul.mubr.msk.f32.vlgmr.msra.gmra.mxu0 %vm447_vm2, %v1029_v42 }
 0x5f0   :  { %2307 = vmatpush3.xpose.msk.msra.mxu0 %vm447_vm2, %v1271_v43  ;;  %2308 = vmatprep.mubr.msk.f32.mxu0 %vm2608_vm1, %v2607_v12 }
 0x5f1   :  { %2316 = vmatprep.subr.mxu0 %v2607_v12 }
 0x5f3   :  { %2309 = vmatmul.mubr.msk.f32.vlgmr.msra.gmra.mxu0 %vm447_vm2, %v1269_v44 }
 0x5f4   :  { %2318 = vmatprep.mubr.msk.f32.mxu0 %vm2608_vm1, %v2607_v12 }
 0x6a4   :  { %v1103_v46 = vpop.f32.mrf.mxu1 }
 0x6a5   :  { %2303 = vmatprep.mubr.msk.f32.mxu1 %vm447_vm2, %v1103_v46 }
 0x6a6   :  { %v2295_v47 = vpop.f32.mrf.mxu1 }
 0x6af   :  { %v1180_v49 = vpop.f32.mrf.mxu0 }
 0x6b0   :  { %2304 = vmatmul.mubr.msk.f32.vlgmr.msra.gmra.mxu1 %vm447_vm2, %v1180_v49 }
 0x6b1   :  { %2312 = vmatpush3.xpose.msk.msra.mxu1 %vm447_vm2, %v1349_v48  ;;  %v2300_v50 = vpop.f32.mrf.mxu0  ;;  %2313 = vmatprep.mubr.msk.f32.mxu1 %vm2608_vm1, %v2607_v12 }
 0x6b2   :  { %2321 = vmatprep.subr.mxu1 %v2607_v12 }
 0x6b3   :  { %v1342_v52 = vpop.f32.mrf.mxu0 }
 0x6b4   :  { %v1343_v53 = vadd.f32 %v1342_v52, %v2767_v32  ;;  %2314 = vmatmul.mubr.msk.f32.vlgmr.msra.gmra.mxu1 %vm447_vm2, %v1347_v51 }
 0x6b5   :  { %v2310_v55 = vpop.f32.mrf.mxu0  ;;  %2323 = vmatprep.mubr.msk.f32.mxu1 %vm2608_vm1, %v2607_v12 }
 0x6b6   :  { %v1424_v57 = vsel %vm447_vm2, %v1343_v53, -inf }
 0x6b7   :  { %1425 = vmax.xlane.f32.xlu0 %v1424_v57 }
 0x740   :  { %v1426_v58 = vpop.xlane.xlu0 %1425 }
 0x741   :  { %v1430_v59 = vsub.f32 %v1343_v53, %v1426_v58 }
 0x743   :  { %v1432_v60 = vmul.f32 1.442695, %v1430_v59 }
 0x745   :  { %2389 = vpow2.f32 %v1432_v60 }
 0x752   :  { %v2390_v61 = vpop.eup %2389 }
 0x753   :  { %v1436_v62 = vsel %vm447_vm2, %v2390_v61, 0.0 }
 0x754   :  { %1437 = vadd.xlane.f32.xlu0 %v1436_v62 }
 0x770   :  { %v2305_v1 = vpop.f32.mrf.mxu1 }
 0x771   :  { %v2864_v3 = vadd.f32 %v2305_v1, %v851_v0 }
 0x772   :  { %v1257_v4 = vpop.f32.mrf.mxu1 }
 0x773   :  { %v2866_v5 = vadd.f32 %v1257_v4, %v850_v2 }
 0x774   :  { %v1420_v6 = vpop.f32.mrf.mxu1 }
 0x775   :  { %v1421_v7 = vadd.f32 %v1420_v6, %v2770_v36 }
 0x776   :  { %v2315_v8 = vpop.f32.mrf.mxu1 }
 0x777   :  { %v1427_v9 = vsel %vm447_vm2, %v1421_v7, -inf }
 0x778   :  { %1428 = vmax.xlane.f32.xlu1 %v1427_v9 }
 0x789   :  { %1522 = vrot.lane.b32.xlu1 %v2782_v54, %s2611_s9 }
 0x78d   :  { %1684 = vrot.lane.b32.xlu1 %v2740_v18, %s2612_s11 }
 0x791   :  { %1762 = vrot.lane.b32.xlu1 %v2747_v21, %s2612_s11 }
 0x795   :  { %1760 = vrot.lane.b32.xlu1 %v2755_v22, %s2612_s11 }
 0x7dd   :  { %v1438_v18 = vpop.xlane.xlu0 %1437 }
 0x801   :  { %v1429_v10 = vpop.xlane.xlu1 %1428 }
 0x802   :  { %v1431_v11 = vsub.f32 %v1421_v7, %v1429_v10 }
 0x804   :  { %v1434_v13 = vmul.f32 1.442695, %v1431_v11 }
 0x805   :  { %v1523_v14 = vpop.permute.xlu1 %1522 }
 0x806   :  { %2391 = vpow2.f32 %v1434_v13  ;;  %2322 = vmatpush3.msra.mxu1 %v1523_v14 }
 0x807   :  { %2331 = vmatprep.subr.mxu1 %v2607_v12  ;;  %2393 = vrcp.f32 %v1438_v18 }
 0x809   :  { %v1685_v25 = vpop.permute.xlu1 %1684 }
 0x80d   :  { %v1763_v29 = vpop.permute.xlu1 %1762 }
 0x811   :  { %v1761_v33 = vpop.permute.xlu1 %1760 }
 0x813   :  { %v2392_v15 = vpop.eup %2391 }
 0x814   :  { %v1439_v16 = vsel %vm447_vm2, %v2392_v15, 0.0  ;;  %v2394_v22 = vpop.eup %2393 }
 0x815   :  { %1440 = vadd.xlane.f32.xlu0 %v1439_v16  ;;  %v1443_v19 = vmul.f32 %v2394_v22, %v2390_v61 }
 0x82b   :  { %1446 = vrot.lane.b32.xlu0 %v2784_v56, %s2611_s9 }
 0x82f   :  { %1682 = vrot.lane.b32.xlu0 %v2744_v20, %s2612_s11 }
 0x89e   :  { %v1441_v21 = vpop.xlane.xlu0 %1440 }
 0x89f   :  { %2395 = vrcp.f32 %v1441_v21 }
 0x8a2   :  { %v1447_v17 = vpop.permute.xlu0 %1446 }
 0x8a3   :  { %2317 = vmatpush3.msra.mxu0 %v1447_v17 }
 0x8a4   :  { %2319 = vmatmul.mubr.msk.f32.vlgmr.msra.gmra.mxu0 %vm447_vm2, %v1443_v19  ;;  %2326 = vmatprep.subr.mxu0 %v1598_v26 }
 0x8a5   :  { %2327 = vmatpush3.msra.mxu0 %v1598_v26 }
 0x8a6   :  { %v1683_v20 = vpop.permute.xlu0 %1682  ;;  %2336 = vmatprep.subr.mxu0 %v2607_v12 }
 0x8ac   :  { %v2396_v23 = vpop.eup %2395 }
 0x8ad   :  { %v1445_v24 = vmul.f32 %v2396_v23, %v2392_v15 }
 0x8af   :  { %2324 = vmatmul.mubr.msk.f32.vlgmr.msra.gmra.mxu1 %vm447_vm2, %v1445_v24 }
 0x8b0   :  { %2332 = vmatpush3.xpose.msk.msra.mxu1 %vm447_vm2, %v1685_v25  ;;  %2333 = vmatprep.mubr.msk.f32.mxu1 %vm2608_vm1, %v2607_v12 }
 0x8b1   :  { %2341 = vmatprep.subr.mxu1 %v2607_v12 }
 0x8b3   :  { %2334 = vmatmul.mubr.msk.f32.vlgmr.msra.gmra.mxu1 %vm447_vm2, %v1683_v20 }
 0x8b4   :  { %2343 = vmatprep.mubr.msk.f32.mxu1 %vm2608_vm1, %v2607_v12 }
 0x964   :  { %v1518_v27 = vpop.f32.mrf.mxu0 }
 0x965   :  { %2328 = vmatprep.mubr.msk.f32.mxu0 %vm447_vm2, %v1518_v27 }
 0x966   :  { %v2320_v28 = vpop.f32.mrf.mxu0 }
 0x96f   :  { %v1594_v30 = vpop.f32.mrf.mxu1 }
 0x970   :  { %2329 = vmatmul.mubr.msk.f32.vlgmr.msra.gmra.mxu0 %vm447_vm2, %v1594_v30 }
 0x971   :  { %2337 = vmatpush3.xpose.msk.msra.mxu0 %vm447_vm2, %v1763_v29  ;;  %v2325_v31 = vpop.f32.mrf.mxu1  ;;  %2338 = vmatprep.mubr.msk.f32.mxu0 %vm2608_vm1, %v2607_v12 }
 0x972   :  { %2346 = vmatprep.subr.mxu0 %v2607_v12 }
 0x973   :  { %v1756_v34 = vpop.f32.mrf.mxu1 }
 0x974   :  { %v1757_v35 = vadd.f32 %v1756_v34, %v2767_v32  ;;  %2339 = vmatmul.mubr.msk.f32.vlgmr.msra.gmra.mxu0 %vm447_vm2, %v1761_v33 }
 0x975   :  { %v2335_v37 = vpop.f32.mrf.mxu1  ;;  %2348 = vmatprep.mubr.msk.f32.mxu0 %vm2608_vm1, %v2607_v12 }
 0x976   :  { %v1838_v38 = vsel %vm447_vm2, %v1757_v35, -inf }
 0x977   :  { %1839 = vmax.xlane.f32.xlu0 %v1838_v38 }
 0xa00   :  { %v1840_v39 = vpop.xlane.xlu0 %1839 }
 0xa01   :  { %v1844_v40 = vsub.f32 %v1757_v35, %v1840_v39 }
 0xa03   :  { %v1846_v41 = vmul.f32 1.442695, %v1844_v40 }
 0xa05   :  { %2397 = vpow2.f32 %v1846_v41 }
 0xa12   :  { %v2398_v42 = vpop.eup %2397 }
 0xa13   :  { %v1850_v43 = vsel %vm447_vm2, %v2398_v42, 0.0 }
 0xa14   :  { %1851 = vadd.xlane.f32.xlu0 %v1850_v43 }
 0xa30   :  { %v2330_v44 = vpop.f32.mrf.mxu0 }
 0xa31   :  { %v1681_v32 = vadd.f32 %v2330_v44, %v2864_v3 }
 0xa32   :  { %v1671_v45 = vpop.f32.mrf.mxu0 }
 0xa33   :  { %v1680_v46 = vadd.f32 %v1671_v45, %v2866_v5 }
 0xa34   :  { %v1834_v47 = vpop.f32.mrf.mxu0 }
 0xa35   :  { %v1835_v12 = vadd.f32 %v1834_v47, %v2770_v36 }
 0xa36   :  { %v2340_v48 = vpop.f32.mrf.mxu0 }
 0xa37   :  { %v1841_v49 = vsel %vm447_vm2, %v1835_v12, -inf }
 0xa38   :  { %1842 = vmax.xlane.f32.xlu1 %v1841_v49 }
 0xa49   :  { %1936 = vrot.lane.b32.xlu1 %v2782_v54, %s2612_s11 }
 0xa9d   :  { %v1852_v36 = vpop.xlane.xlu0 %1851 }
 0xac1   :  { %v1843_v50 = vpop.xlane.xlu1 %1842 }
 0xac2   :  { %v1845_v51 = vsub.f32 %v1835_v12, %v1843_v50 }
 0xac4   :  { %v1848_v52 = vmul.f32 1.442695, %v1845_v51 }
 0xac5   :  { %v1937_v53 = vpop.permute.xlu1 %1936 }
 0xac6   :  { %2399 = vpow2.f32 %v1848_v52  ;;  %2347 = vmatpush3.msra.mxu0 %v1937_v53 }
 0xac7   :  { %2401 = vrcp.f32 %v1852_v36 }
 0xad3   :  { %v2400_v55 = vpop.eup %2399 }
 0xad4   :  { %v1853_v57 = vsel %vm447_vm2, %v2400_v55, 0.0  ;;  %v2402_v59 = vpop.eup %2401 }
 0xad5   :  { %1854 = vadd.xlane.f32.xlu0 %v1853_v57  ;;  %v1857_v54 = vmul.f32 %v2402_v59, %v2398_v42 }
 0xaeb   :  { %1860 = vrot.lane.b32.xlu0 %v2784_v56, %s2612_s11 }
 0xb5e   :  { %v1855_v58 = vpop.xlane.xlu0 %1854 }
 0xb5f   :  { %2403 = vrcp.f32 %v1855_v58 }
 0xb62   :  { %v1861_v60 = vpop.permute.xlu0 %1860 }
 0xb63   :  { %2342 = vmatpush3.msra.mxu1 %v1861_v60 }
 0xb64   :  { %2344 = vmatmul.mubr.msk.f32.vlgmr.msra.gmra.mxu1 %vm447_vm2, %v1857_v54  ;;  %2351 = vmatprep.subr.mxu1 %v2012_v63 }
 0xb65   :  { %2352 = vmatpush3.msra.mxu1 %v2012_v63 }
 0xb6c   :  { %v2404_v61 = vpop.eup %2403 }
 0xb6d   :  { %v1859_v62 = vmul.f32 %v2404_v61, %v2400_v55 }
 0xb6f   :  { %2349 = vmatmul.mubr.msk.f32.vlgmr.msra.gmra.mxu0 %vm447_vm2, %v1859_v62 }
 0xc24   :  { %v1932_v0 = vpop.f32.mrf.mxu1 }
 0xc25   :  { %2353 = vmatprep.mubr.msk.f32.mxu1 %vm447_vm2, %v1932_v0 }
 0xc26   :  { %v2345_v56 = vpop.f32.mrf.mxu1 }
 0xc2f   :  { %v2008_v1 = vpop.f32.mrf.mxu0 }
 0xc30   :  { %2354 = vmatmul.mubr.msk.f32.vlgmr.msra.gmra.mxu1 %vm447_vm2, %v2008_v1 }
 0xc31   :  { %v2350_v2 = vpop.f32.mrf.mxu0 }
 0xcf0   :  { %v2355_v3 = vpop.f32.mrf.mxu1 }
 0xcf1   :  { %v2095_v4 = vadd.f32 %v2355_v3, %v1681_v32 }
 0xcf2   :  { %v2085_v5 = vpop.f32.mrf.mxu1 }
 0xcf3   :  { %2097 = vst.msk [vmem:[#allocation16 + $0x8] sm:$0xff] %vm164_vm0, %v2095_v4  ;;  %v2094_v6 = vadd.f32 %v2085_v5, %v1680_v46 }
 0xcf5   :  { %2096 = vst.msk [vmem:[#allocation16] sm:$0xff] %vm164_vm0, %v2094_v6 }
 0xcf6   :  { %2576 = shalt.err (!%p2573_p2)
}
 0xcf7   :  { %2109 = dma.vmem_to_hbm [thread:$0]  %s2104_s6, 256, %s2939_s12, [#allocation4], %s2599_s26, %s2599_s26, %s2600_s27  }
 0xcf8   :  { %2595 = dma.done.wait [#allocation4], 256  }
 0xcf9   :  { %2596 = vsyncadd [#allocation4], 4294967040 }
 0xcfa   :  { %2113 = vsyncpa [#allocation3], 1 }
 0xcfb   :  { %2114 = vsyncpa [#allocation6], 1 }
 0xcfc   :  { %2115 = vsyncpa [#allocation9], 1 }
 0xcfd   :  { %2116 = vsyncpa [#allocation12], 1 }
 0xcfe   :  { %2117 = vsyncpa [#allocation15], 1 }
 0xcff   :  { %2118 = vsyncpa [#allocation4], 1 }

</bundles_post_ra>
